<compile_context>
chip_gen: v6e
topology: v6e:2x2x1
jax: 0.10.0
libtpu: 0.0.40
codegen_flags: <defaults>
</compile_context>

<pallas_src>
import functools

import numpy as np
import jax
import jax.numpy as jnp
from jax import lax
from jax.experimental import pallas as pl
from jax.experimental.pallas import tpu as pltpu


# ----------------------------- Pallas kernel --------------------------------

def _conv_block_kernel(x_ref, g1_ref, bt1_ref, w1_ref, b1_ref,
                       g2_ref, bt2_ref, w2_ref, b2_ref,
                       m1_ref, m2_ref, o_ref, *, N, H, W, Cp1, Cp2, eps):
    """Fused ConvBlock forward for the whole (tiny) batch in one grid step.

    Layout inside the kernel is channel-major batch-flat: (C, N*H*W), i.e.
    images are concatenated along the 128-lane axis.  All refs:
      x_ref  : (N, Cin, L)       NCHW input, spatial flattened (L = H*W)
      g*/bt* : (C, 1)            BN gamma / beta (per stage)
      w*_ref : (Cout, 9*Cpad)    conv weights, cols ordered (tap, ci), padded
                                 channel columns are zero
      b*_ref : (Cout, 1)         conv bias
      m*_ref : (9*Cpad, N*L)     per-tap validity mask (zero where the tap
                                 reads outside its image)
      o_ref  : (N, Cout, L)      output (lane-dense stores)
    """
    L = H * W
    NL = N * L
    inv_count = 1.0 / float(NL)

    # ---- fold the batch onto the lane axis: (Cin, N*L), lane-aligned concat.
    xf = jnp.concatenate([x_ref[n] for n in range(N)], axis=1)

    def bn_relu(v, g_ref, b_ref):
        # Training-mode batch norm (biased variance), two-pass for stability.
        mean = jnp.sum(v, axis=1, keepdims=True) * inv_count
        d = v - mean
        var = jnp.sum(d * d, axis=1, keepdims=True) * inv_count
        scale = g_ref[...] * lax.rsqrt(var + eps)
        return jnp.maximum(d * scale + b_ref[...], 0.0)

    def conv3x3(act, w_ref, b_ref, mask_ref, cpad):
        # Zero-pad channel rows up to a full 8-sublane tile (weights for the
        # padded channels are zero as well).
        c = act.shape[0]
        if c < cpad:
            act = jnp.concatenate(
                [act, jnp.zeros((cpad - c, NL), act.dtype)], axis=0)
        # im2col via lane rolls: tap (kh,kw) is a static rotation by
        # s = (kh-1)*W + (kw-1); every position where the rolled value is not
        # the true neighbour (image edge or cross-image wrap) is zeroed by the
        # precomputed mask, so no zero halo is needed.
        taps = []
        for kh in range(3):
            for kw in range(3):
                s = (kh - 1) * W + (kw - 1)
                taps.append(act if s == 0
                            else pltpu.roll(act, (-s) % NL, axis=1))
        patches = jnp.concatenate(taps, axis=0) * mask_ref[...]   # (9*cpad, NL)
        out = jnp.dot(w_ref[...], patches,
                      preferred_element_type=jnp.float32)
        return out + b_ref[...]

    # Stage 1: bn1 -> relu -> conv1
    act1 = bn_relu(xf, g1_ref, bt1_ref)                 # (Cin, NL)
    out1 = conv3x3(act1, w1_ref, b1_ref, m1_ref, Cp1)   # (mid, NL)

    # Stage 2: bn2 (batch stats of out1, never leaves VMEM) -> relu -> conv2
    act2 = bn_relu(out1, g2_ref, bt2_ref)               # (mid, NL)
    out2 = conv3x3(act2, w2_ref, b2_ref, m2_ref, Cp2)   # (Cout, NL)

    # Residual add (stride=1 path: Cout == Cin) and lane-dense NCHW stores.
    out2 = out2 + xf
    for n in range(N):
        o_ref[n] = out2[:, n * L:(n + 1) * L].astype(o_ref.dtype)


# ------------------------------- glue / model -------------------------------

def _round_up(x, m):
    return ((x + m - 1) // m) * m


def _big_tap_mask(H, W, N, Cp):
    """(9*Cp, N*H*W) f32: 1.0 where tap (kh,kw) reads inside its own image."""
    h = np.arange(H).reshape(H, 1)
    w = np.arange(W).reshape(1, W)
    rows = []
    for kh in range(3):
        for kw in range(3):
            dh, dw = kh - 1, kw - 1
            ok = (h + dh >= 0) & (h + dh < H) & (w + dw >= 0) & (w + dw < W)
            rows.append(ok.reshape(-1))
    m = np.stack(rows, axis=0).astype(np.float32)   # (9, L)
    m = np.tile(m, (1, N))                          # (9, N*L)  images on lanes
    m = np.repeat(m, Cp, axis=0)                    # (9*Cp, N*L) tap-major rows
    return jnp.asarray(m)


def _pack_weights(w_oihw, cpad):
    """PyTorch OIHW (O,Ci,3,3) -> (O, 9*cpad), cols (tap, ci), pad cols zero."""
    o, ci, _, _ = w_oihw.shape
    wt = jnp.transpose(w_oihw, (0, 2, 3, 1)).reshape(o, 9, ci).astype(jnp.float32)
    if cpad > ci:
        wt = jnp.concatenate(
            [wt, jnp.zeros((o, 9, cpad - ci), jnp.float32)], axis=2)
    return wt.reshape(o, 9 * cpad)


def conv_block_forward(x_nchw, params, eps=1e-5):
    """ConvBlock forward, stride=1 path (downsample is None), NCHW in/out."""
    N, Cin, H, W = x_nchw.shape
    mid = params["w1"].shape[0]
    Cout = params["w2"].shape[0]
    assert Cout == Cin, "stride=1 ConvBlock path requires in_planes == out_planes"
    L = H * W
    NL = N * L
    Cp1 = _round_up(Cin, 8)
    Cp2 = _round_up(mid, 8)

    x_flat = x_nchw.astype(jnp.float32).reshape(N, Cin, L)   # free reshape

    w1m = _pack_weights(params["w1"], Cp1)    # (mid,  9*Cp1)
    w2m = _pack_weights(params["w2"], Cp2)    # (Cout, 9*Cp2)
    m1 = _big_tap_mask(H, W, N, Cp1)
    m2 = _big_tap_mask(H, W, N, Cp2)

    def col(v):
        return v.reshape(-1, 1).astype(jnp.float32)

    def full(shape):
        return pl.BlockSpec(shape, lambda i, _n=len(shape): (0,) * _n)

    kernel = functools.partial(_conv_block_kernel, N=N, H=H, W=W,
                               Cp1=Cp1, Cp2=Cp2, eps=float(eps))

    in_specs = [
        full((N, Cin, L)),                    # x
        full((Cin, 1)), full((Cin, 1)),       # bn1 gamma/beta
        full((mid, 9 * Cp1)), full((mid, 1)), # w1 / b1
        full((mid, 1)), full((mid, 1)),       # bn2 gamma/beta
        full((Cout, 9 * Cp2)), full((Cout, 1)),  # w2 / b2
        full((9 * Cp1, NL)), full((9 * Cp2, NL)),  # tap masks
    ]

    out = pl.pallas_call(
        kernel,
        out_shape=jax.ShapeDtypeStruct((N, Cout, L), jnp.float32),
        grid_spec=pltpu.PrefetchScalarGridSpec(
            num_scalar_prefetch=0,
            grid=(1,),
            in_specs=in_specs,
            out_specs=full((N, Cout, L)),
        ),
        compiler_params=pltpu.CompilerParams(
            dimension_semantics=("arbitrary",)),
    )(x_flat,
      col(params["bn1_gamma"]), col(params["bn1_beta"]),
      w1m, col(params["b1"]),
      col(params["bn2_gamma"]), col(params["bn2_beta"]),
      w2m, col(params["b2"]),
      m1, m2)

    return out.reshape(N, Cout, H, W)          # free reshape back to NCHW


# --------------------------- pure-JAX reference ------------------------------

def conv_block_ref(x_nchw, params, eps=1e-5):
    x = x_nchw.astype(jnp.float32)

    def bn_relu(v, gamma, beta):
        mean = jnp.mean(v, axis=(0, 2, 3), keepdims=True)
        var = jnp.mean(jnp.square(v - mean), axis=(0, 2, 3), keepdims=True)
        vhat = (v - mean) / jnp.sqrt(var + eps)
        return jnp.maximum(vhat * gamma.reshape(1, -1, 1, 1)
                           + beta.reshape(1, -1, 1, 1), 0.0)

    def conv(v, w, b):
        y = lax.conv_general_dilated(
            v, w, window_strides=(1, 1), padding=((1, 1), (1, 1)),
            dimension_numbers=("NCHW", "OIHW", "NCHW"))
        return y + b.reshape(1, -1, 1, 1)

    o1 = conv(bn_relu(x, params["bn1_gamma"], params["bn1_beta"]),
              params["w1"], params["b1"])
    o2 = conv(bn_relu(o1, params["bn2_gamma"], params["bn2_beta"]),
              params["w2"], params["b2"])
    return o2 + x


# ----------------------------------- main ------------------------------------

if __name__ == "__main__":
    key = jax.random.PRNGKey(0)
    ks = jax.random.split(key, 9)

    # ConvBlock(in_planes=4, mid_planes=8, out_planes=4, stride=1)
    in_p, mid_p, out_p = 4, 8, 4
    N, H, W = 2, 16, 16

    params = {
        "bn1_gamma": 1.0 + 0.1 * jax.random.normal(ks[0], (in_p,), jnp.float32),
        "bn1_beta": 0.1 * jax.random.normal(ks[1], (in_p,), jnp.float32),
        "w1": jax.random.normal(ks[2], (mid_p, in_p, 3, 3), jnp.float32)
              / jnp.sqrt(9.0 * in_p),
        "b1": 0.05 * jax.random.normal(ks[3], (mid_p,), jnp.float32),
        "bn2_gamma": 1.0 + 0.1 * jax.random.normal(ks[4], (mid_p,), jnp.float32),
        "bn2_beta": 0.1 * jax.random.normal(ks[5], (mid_p,), jnp.float32),
        "w2": jax.random.normal(ks[6], (out_p, mid_p, 3, 3), jnp.float32)
              / jnp.sqrt(9.0 * mid_p),
        "b2": 0.05 * jax.random.normal(ks[7], (out_p,), jnp.float32),
    }

    x = jax.random.normal(ks[8], (N, in_p, H, W), jnp.float32)   # NCHW, PyTorch-style

    fwd = jax.jit(conv_block_forward)
    out = jax.block_until_ready(fwd(x, params))
    ref = jax.block_until_ready(conv_block_ref(x, params))

    np.testing.assert_allclose(np.asarray(out), np.asarray(ref),
                               rtol=1e-4, atol=1e-4)

    print("KERNEL_OK")
</pallas_src>

<mosaic_0001>
module attributes {stable_mosaic.version = 11 : i64} {
  func.func @_conv_block_kernel(%arg0: i32, %arg1: memref<2x4x256xf32, #tpu.memory_space<vmem>>, %arg2: memref<4x1xf32, #tpu.memory_space<vmem>>, %arg3: memref<4x1xf32, #tpu.memory_space<vmem>>, %arg4: memref<8x72xf32, #tpu.memory_space<vmem>>, %arg5: memref<8x1xf32, #tpu.memory_space<vmem>>, %arg6: memref<8x1xf32, #tpu.memory_space<vmem>>, %arg7: memref<8x1xf32, #tpu.memory_space<vmem>>, %arg8: memref<4x72xf32, #tpu.memory_space<vmem>>, %arg9: memref<4x1xf32, #tpu.memory_space<vmem>>, %arg10: memref<72x512xf32, #tpu.memory_space<vmem>>, %arg11: memref<72x512xf32, #tpu.memory_space<vmem>>, %arg12: memref<2x4x256xf32, #tpu.memory_space<vmem>>) attributes {dimension_semantics = [#tpu.dimension_semantics<arbitrary>], iteration_bounds = array<i64: 1>, scalar_prefetch = 0 : i64, scratch_operands = 0 : i64, tpu.core_type = #tpu.core_type<tc>, window_params = [{pipeline_mode = #tpu.pipeline_mode<synchronous>, transform_indices = @transform_0, window_bounds = array<i64: 2, 4, 256>}, {pipeline_mode = #tpu.pipeline_mode<synchronous>, transform_indices = @transform_1, window_bounds = array<i64: 4, 1>}, {pipeline_mode = #tpu.pipeline_mode<synchronous>, transform_indices = @transform_2, window_bounds = array<i64: 4, 1>}, {pipeline_mode = #tpu.pipeline_mode<synchronous>, transform_indices = @transform_3, window_bounds = array<i64: 8, 72>}, {pipeline_mode = #tpu.pipeline_mode<synchronous>, transform_indices = @transform_4, window_bounds = array<i64: 8, 1>}, {pipeline_mode = #tpu.pipeline_mode<synchronous>, transform_indices = @transform_5, window_bounds = array<i64: 8, 1>}, {pipeline_mode = #tpu.pipeline_mode<synchronous>, transform_indices = @transform_6, window_bounds = array<i64: 8, 1>}, {pipeline_mode = #tpu.pipeline_mode<synchronous>, transform_indices = @transform_7, window_bounds = array<i64: 4, 72>}, {pipeline_mode = #tpu.pipeline_mode<synchronous>, transform_indices = @transform_8, window_bounds = array<i64: 4, 1>}, {pipeline_mode = #tpu.pipeline_mode<synchronous>, transform_indices = @transform_9, window_bounds = array<i64: 72, 512>}, {pipeline_mode = #tpu.pipeline_mode<synchronous>, transform_indices = @transform_10, window_bounds = array<i64: 72, 512>}, {pipeline_mode = #tpu.pipeline_mode<synchronous>, transform_indices = @transform_11, window_bounds = array<i64: 2, 4, 256>}]} {
    %c0 = arith.constant 0 : index
    %c0_0 = arith.constant 0 : index
    %c0_1 = arith.constant 0 : index
    %0 = vector.load %arg1[%c0, %c0_0, %c0_1] : memref<2x4x256xf32, #tpu.memory_space<vmem>>, vector<1x4x256xf32>
    %1 = vector.shape_cast %0 : vector<1x4x256xf32> to vector<4x256xf32>
    %c1 = arith.constant 1 : index
    %c0_2 = arith.constant 0 : index
    %c0_3 = arith.constant 0 : index
    %2 = vector.load %arg1[%c1, %c0_2, %c0_3] : memref<2x4x256xf32, #tpu.memory_space<vmem>>, vector<1x4x256xf32>
    %3 = vector.shape_cast %2 : vector<1x4x256xf32> to vector<4x256xf32>
    %4 = tpu.concatenate %1, %3 in 1 : vector<4x256xf32>, vector<4x256xf32> -> vector<4x512xf32>
    %cst = arith.constant dense<0.000000e+00> : vector<4xf32>
    %5 = vector.multi_reduction <add>, %4, %cst [1] : vector<4x512xf32> to vector<4xf32>
    %6 = vector.shape_cast %5 : vector<4xf32> to vector<4x1xf32>
    %cst_4 = arith.constant 0.001953125 : f32
    %7 = vector.broadcast %cst_4 : f32 to vector<4x1xf32>
    %8 = arith.mulf %6, %7 : vector<4x1xf32>
    %9 = vector.broadcast %8 : vector<4x1xf32> to vector<4x512xf32>
    %10 = arith.subf %4, %9 : vector<4x512xf32>
    %11 = arith.mulf %10, %10 : vector<4x512xf32>
    %cst_5 = arith.constant dense<0.000000e+00> : vector<4xf32>
    %12 = vector.multi_reduction <add>, %11, %cst_5 [1] : vector<4x512xf32> to vector<4xf32>
    %13 = vector.shape_cast %12 : vector<4xf32> to vector<4x1xf32>
    %cst_6 = arith.constant 0.001953125 : f32
    %14 = vector.broadcast %cst_6 : f32 to vector<4x1xf32>
    %15 = arith.mulf %13, %14 : vector<4x1xf32>
    %c0_7 = arith.constant 0 : index
    %c0_8 = arith.constant 0 : index
    %16 = vector.load %arg2[%c0_7, %c0_8] : memref<4x1xf32, #tpu.memory_space<vmem>>, vector<4x1xf32>
    %cst_9 = arith.constant 9.99999974E-6 : f32
    %17 = vector.broadcast %cst_9 : f32 to vector<4x1xf32>
    %18 = arith.addf %15, %17 : vector<4x1xf32>
    %19 = math.rsqrt %18 : vector<4x1xf32>
    %20 = arith.mulf %16, %19 : vector<4x1xf32>
    %21 = vector.broadcast %20 : vector<4x1xf32> to vector<4x512xf32>
    %22 = arith.mulf %10, %21 : vector<4x512xf32>
    %c0_10 = arith.constant 0 : index
    %c0_11 = arith.constant 0 : index
    %23 = vector.load %arg3[%c0_10, %c0_11] : memref<4x1xf32, #tpu.memory_space<vmem>>, vector<4x1xf32>
    %24 = vector.broadcast %23 : vector<4x1xf32> to vector<4x512xf32>
    %25 = arith.addf %22, %24 : vector<4x512xf32>
    %cst_12 = arith.constant 0.000000e+00 : f32
    %26 = vector.broadcast %cst_12 : f32 to vector<4x512xf32>
    %27 = arith.maximumf %25, %26 : vector<4x512xf32>
    %cst_13 = arith.constant 0.000000e+00 : f32
    %28 = vector.broadcast %cst_13 : f32 to vector<4x512xf32>
    %29 = tpu.concatenate %27, %28 in 0 : vector<4x512xf32>, vector<4x512xf32> -> vector<8x512xf32>
    %c17_i32 = arith.constant 17 : i32
    %30 = tpu.dynamic_rotate %29 by %c17_i32 dim 1 : vector<8x512xf32>, i32 -> vector<8x512xf32>
    %c16_i32 = arith.constant 16 : i32
    %31 = tpu.dynamic_rotate %29 by %c16_i32 dim 1 : vector<8x512xf32>, i32 -> vector<8x512xf32>
    %c15_i32 = arith.constant 15 : i32
    %32 = tpu.dynamic_rotate %29 by %c15_i32 dim 1 : vector<8x512xf32>, i32 -> vector<8x512xf32>
    %c1_i32 = arith.constant 1 : i32
    %33 = tpu.dynamic_rotate %29 by %c1_i32 dim 1 : vector<8x512xf32>, i32 -> vector<8x512xf32>
    %c511_i32 = arith.constant 511 : i32
    %34 = tpu.dynamic_rotate %29 by %c511_i32 dim 1 : vector<8x512xf32>, i32 -> vector<8x512xf32>
    %c497_i32 = arith.constant 497 : i32
    %35 = tpu.dynamic_rotate %29 by %c497_i32 dim 1 : vector<8x512xf32>, i32 -> vector<8x512xf32>
    %c496_i32 = arith.constant 496 : i32
    %36 = tpu.dynamic_rotate %29 by %c496_i32 dim 1 : vector<8x512xf32>, i32 -> vector<8x512xf32>
    %c495_i32 = arith.constant 495 : i32
    %37 = tpu.dynamic_rotate %29 by %c495_i32 dim 1 : vector<8x512xf32>, i32 -> vector<8x512xf32>
    %38 = tpu.concatenate %30, %31, %32, %33, %29, %34, %35, %36, %37 in 0 : vector<8x512xf32>, vector<8x512xf32>, vector<8x512xf32>, vector<8x512xf32>, vector<8x512xf32>, vector<8x512xf32>, vector<8x512xf32>, vector<8x512xf32>, vector<8x512xf32> -> vector<72x512xf32>
    %c0_14 = arith.constant 0 : index
    %c0_15 = arith.constant 0 : index
    %39 = vector.load %arg10[%c0_14, %c0_15] : memref<72x512xf32, #tpu.memory_space<vmem>>, vector<72x512xf32>
    %40 = arith.mulf %38, %39 : vector<72x512xf32>
    %c0_16 = arith.constant 0 : index
    %c0_17 = arith.constant 0 : index
    %41 = vector.load %arg4[%c0_16, %c0_17] : memref<8x72xf32, #tpu.memory_space<vmem>>, vector<8x72xf32>
    %cst_18 = arith.constant dense<0.000000e+00> : vector<8x512xf32>
    %42 = tpu.matmul %41, %40, %cst_18 {dimension_numbers = #tpu.dot_dimension_numbers<[1], [0], [0], [1], [0, 0, 1, 1], [], []>} : vector<8x72xf32>, vector<72x512xf32>, vector<8x512xf32> -> vector<8x512xf32>
    %c0_19 = arith.constant 0 : index
    %c0_20 = arith.constant 0 : index
    %43 = vector.load %arg5[%c0_19, %c0_20] : memref<8x1xf32, #tpu.memory_space<vmem>>, vector<8x1xf32>
    %44 = vector.broadcast %43 : vector<8x1xf32> to vector<8x512xf32>
    %45 = arith.addf %42, %44 : vector<8x512xf32>
    %cst_21 = arith.constant dense<0.000000e+00> : vector<8xf32>
    %46 = vector.multi_reduction <add>, %45, %cst_21 [1] : vector<8x512xf32> to vector<8xf32>
    %47 = vector.shape_cast %46 : vector<8xf32> to vector<8x1xf32>
    %cst_22 = arith.constant 0.001953125 : f32
    %48 = vector.broadcast %cst_22 : f32 to vector<8x1xf32>
    %49 = arith.mulf %47, %48 : vector<8x1xf32>
    %50 = vector.broadcast %49 : vector<8x1xf32> to vector<8x512xf32>
    %51 = arith.subf %45, %50 : vector<8x512xf32>
    %52 = arith.mulf %51, %51 : vector<8x512xf32>
    %cst_23 = arith.constant dense<0.000000e+00> : vector<8xf32>
    %53 = vector.multi_reduction <add>, %52, %cst_23 [1] : vector<8x512xf32> to vector<8xf32>
    %54 = vector.shape_cast %53 : vector<8xf32> to vector<8x1xf32>
    %cst_24 = arith.constant 0.001953125 : f32
    %55 = vector.broadcast %cst_24 : f32 to vector<8x1xf32>
    %56 = arith.mulf %54, %55 : vector<8x1xf32>
    %c0_25 = arith.constant 0 : index
    %c0_26 = arith.constant 0 : index
    %57 = vector.load %arg6[%c0_25, %c0_26] : memref<8x1xf32, #tpu.memory_space<vmem>>, vector<8x1xf32>
    %cst_27 = arith.constant 9.99999974E-6 : f32
    %58 = vector.broadcast %cst_27 : f32 to vector<8x1xf32>
    %59 = arith.addf %56, %58 : vector<8x1xf32>
    %60 = math.rsqrt %59 : vector<8x1xf32>
    %61 = arith.mulf %57, %60 : vector<8x1xf32>
    %62 = vector.broadcast %61 : vector<8x1xf32> to vector<8x512xf32>
    %63 = arith.mulf %51, %62 : vector<8x512xf32>
    %c0_28 = arith.constant 0 : index
    %c0_29 = arith.constant 0 : index
    %64 = vector.load %arg7[%c0_28, %c0_29] : memref<8x1xf32, #tpu.memory_space<vmem>>, vector<8x1xf32>
    %65 = vector.broadcast %64 : vector<8x1xf32> to vector<8x512xf32>
    %66 = arith.addf %63, %65 : vector<8x512xf32>
    %cst_30 = arith.constant 0.000000e+00 : f32
    %67 = vector.broadcast %cst_30 : f32 to vector<8x512xf32>
    %68 = arith.maximumf %66, %67 : vector<8x512xf32>
    %c17_i32_31 = arith.constant 17 : i32
    %69 = tpu.dynamic_rotate %68 by %c17_i32_31 dim 1 : vector<8x512xf32>, i32 -> vector<8x512xf32>
    %c16_i32_32 = arith.constant 16 : i32
    %70 = tpu.dynamic_rotate %68 by %c16_i32_32 dim 1 : vector<8x512xf32>, i32 -> vector<8x512xf32>
    %c15_i32_33 = arith.constant 15 : i32
    %71 = tpu.dynamic_rotate %68 by %c15_i32_33 dim 1 : vector<8x512xf32>, i32 -> vector<8x512xf32>
    %c1_i32_34 = arith.constant 1 : i32
    %72 = tpu.dynamic_rotate %68 by %c1_i32_34 dim 1 : vector<8x512xf32>, i32 -> vector<8x512xf32>
    %c511_i32_35 = arith.constant 511 : i32
    %73 = tpu.dynamic_rotate %68 by %c511_i32_35 dim 1 : vector<8x512xf32>, i32 -> vector<8x512xf32>
    %c497_i32_36 = arith.constant 497 : i32
    %74 = tpu.dynamic_rotate %68 by %c497_i32_36 dim 1 : vector<8x512xf32>, i32 -> vector<8x512xf32>
    %c496_i32_37 = arith.constant 496 : i32
    %75 = tpu.dynamic_rotate %68 by %c496_i32_37 dim 1 : vector<8x512xf32>, i32 -> vector<8x512xf32>
    %c495_i32_38 = arith.constant 495 : i32
    %76 = tpu.dynamic_rotate %68 by %c495_i32_38 dim 1 : vector<8x512xf32>, i32 -> vector<8x512xf32>
    %77 = tpu.concatenate %69, %70, %71, %72, %68, %73, %74, %75, %76 in 0 : vector<8x512xf32>, vector<8x512xf32>, vector<8x512xf32>, vector<8x512xf32>, vector<8x512xf32>, vector<8x512xf32>, vector<8x512xf32>, vector<8x512xf32>, vector<8x512xf32> -> vector<72x512xf32>
    %c0_39 = arith.constant 0 : index
    %c0_40 = arith.constant 0 : index
    %78 = vector.load %arg11[%c0_39, %c0_40] : memref<72x512xf32, #tpu.memory_space<vmem>>, vector<72x512xf32>
    %79 = arith.mulf %77, %78 : vector<72x512xf32>
    %c0_41 = arith.constant 0 : index
    %c0_42 = arith.constant 0 : index
    %80 = vector.load %arg8[%c0_41, %c0_42] : memref<4x72xf32, #tpu.memory_space<vmem>>, vector<4x72xf32>
    %cst_43 = arith.constant dense<0.000000e+00> : vector<4x512xf32>
    %81 = tpu.matmul %80, %79, %cst_43 {dimension_numbers = #tpu.dot_dimension_numbers<[1], [0], [0], [1], [0, 0, 1, 1], [], []>} : vector<4x72xf32>, vector<72x512xf32>, vector<4x512xf32> -> vector<4x512xf32>
    %c0_44 = arith.constant 0 : index
    %c0_45 = arith.constant 0 : index
    %82 = vector.load %arg9[%c0_44, %c0_45] : memref<4x1xf32, #tpu.memory_space<vmem>>, vector<4x1xf32>
    %83 = vector.broadcast %82 : vector<4x1xf32> to vector<4x512xf32>
    %84 = arith.addf %81, %83 : vector<4x512xf32>
    %85 = arith.addf %84, %4 : vector<4x512xf32>
    %86 = vector.extract_strided_slice %85 {offsets = [0, 0], sizes = [4, 256], strides = [1, 1]} : vector<4x512xf32> to vector<4x256xf32>
    %c0_46 = arith.constant 0 : index
    %c0_47 = arith.constant 0 : index
    %c0_48 = arith.constant 0 : index
    %87 = vector.load %arg12[%c0_46, %c0_47, %c0_48] : memref<2x4x256xf32, #tpu.memory_space<vmem>>, vector<1x4x256xf32>
    %88 = vector.shape_cast %87 : vector<1x4x256xf32> to vector<4x256xf32>
    %89 = vector.shape_cast %86 : vector<4x256xf32> to vector<1x4x256xf32>
    tpu.vector_store %arg12[%c0_46, %c0_47, %c0_48], %89 {strides = array<i32>} : memref<2x4x256xf32, #tpu.memory_space<vmem>>, vector<1x4x256xf32>,
    %90 = vector.extract_strided_slice %85 {offsets = [0, 256], sizes = [4, 256], strides = [1, 1]} : vector<4x512xf32> to vector<4x256xf32>
    %c1_49 = arith.constant 1 : index
    %c0_50 = arith.constant 0 : index
    %c0_51 = arith.constant 0 : index
    %91 = vector.load %arg12[%c1_49, %c0_50, %c0_51] : memref<2x4x256xf32, #tpu.memory_space<vmem>>, vector<1x4x256xf32>
    %92 = vector.shape_cast %91 : vector<1x4x256xf32> to vector<4x256xf32>
    %93 = vector.shape_cast %90 : vector<4x256xf32> to vector<1x4x256xf32>
    tpu.vector_store %arg12[%c1_49, %c0_50, %c0_51], %93 {strides = array<i32>} : memref<2x4x256xf32, #tpu.memory_space<vmem>>, vector<1x4x256xf32>,
    return
  }
  func.func @transform_0(%arg0: i32) -> (i32, i32, i32) {
    %c0_i32 = arith.constant 0 : i32
    %c0_i32_0 = arith.constant 0 : i32
    %c0_i32_1 = arith.constant 0 : i32
    %c0_i32_2 = arith.constant 0 : i32
    return %c0_i32, %c0_i32_0, %c0_i32_1 : i32, i32, i32
  }
  func.func @transform_1(%arg0: i32) -> (i32, i32) {
    %c0_i32 = arith.constant 0 : i32
    %c0_i32_0 = arith.constant 0 : i32
    %c0_i32_1 = arith.constant 0 : i32
    return %c0_i32, %c0_i32_0 : i32, i32
  }
  func.func @transform_2(%arg0: i32) -> (i32, i32) {
    %c0_i32 = arith.constant 0 : i32
    %c0_i32_0 = arith.constant 0 : i32
    %c0_i32_1 = arith.constant 0 : i32
    return %c0_i32, %c0_i32_0 : i32, i32
  }
  func.func @transform_3(%arg0: i32) -> (i32, i32) {
    %c0_i32 = arith.constant 0 : i32
    %c0_i32_0 = arith.constant 0 : i32
    %c0_i32_1 = arith.constant 0 : i32
    return %c0_i32, %c0_i32_0 : i32, i32
  }
  func.func @transform_4(%arg0: i32) -> (i32, i32) {
    %c0_i32 = arith.constant 0 : i32
    %c0_i32_0 = arith.constant 0 : i32
    %c0_i32_1 = arith.constant 0 : i32
    return %c0_i32, %c0_i32_0 : i32, i32
  }
  func.func @transform_5(%arg0: i32) -> (i32, i32) {
    %c0_i32 = arith.constant 0 : i32
    %c0_i32_0 = arith.constant 0 : i32
    %c0_i32_1 = arith.constant 0 : i32
    return %c0_i32, %c0_i32_0 : i32, i32
  }
  func.func @transform_6(%arg0: i32) -> (i32, i32) {
    %c0_i32 = arith.constant 0 : i32
    %c0_i32_0 = arith.constant 0 : i32
    %c0_i32_1 = arith.constant 0 : i32
    return %c0_i32, %c0_i32_0 : i32, i32
  }
  func.func @transform_7(%arg0: i32) -> (i32, i32) {
    %c0_i32 = arith.constant 0 : i32
    %c0_i32_0 = arith.constant 0 : i32
    %c0_i32_1 = arith.constant 0 : i32
    return %c0_i32, %c0_i32_0 : i32, i32
  }
  func.func @transform_8(%arg0: i32) -> (i32, i32) {
    %c0_i32 = arith.constant 0 : i32
    %c0_i32_0 = arith.constant 0 : i32
    %c0_i32_1 = arith.constant 0 : i32
    return %c0_i32, %c0_i32_0 : i32, i32
  }
  func.func @transform_9(%arg0: i32) -> (i32, i32) {
    %c0_i32 = arith.constant 0 : i32
    %c0_i32_0 = arith.constant 0 : i32
    %c0_i32_1 = arith.constant 0 : i32
    return %c0_i32, %c0_i32_0 : i32, i32
  }
  func.func @transform_10(%arg0: i32) -> (i32, i32) {
    %c0_i32 = arith.constant 0 : i32
    %c0_i32_0 = arith.constant 0 : i32
    %c0_i32_1 = arith.constant 0 : i32
    return %c0_i32, %c0_i32_0 : i32, i32
  }
  func.func @transform_11(%arg0: i32) -> (i32, i32, i32) {
    %c0_i32 = arith.constant 0 : i32
    %c0_i32_0 = arith.constant 0 : i32
    %c0_i32_1 = arith.constant 0 : i32
    %c0_i32_2 = arith.constant 0 : i32
    return %c0_i32, %c0_i32_0, %c0_i32_1 : i32, i32, i32
  }
}

</mosaic_0001>

<bundles_post_ra>
// kernel: conv_block_forward.1
= control target key start
LH: loop header
LB: loop body
LE: loop exit
PB: predicated region body
PF: predicated region fallthrough
CT: control target
= control target key end

     0   :  { %vm47_vm0 = vcmask 1043456   ;;  %v850_v28 = vmov 0   ;;  %s853_s25 = smov 112   ;;  %s854_s26 = smov 127   ;;  %v859_v54 = vmov 0.0   ;;  %v115_v56 = vlaneseq  ;;  %s1526_s0 = inlined_call_operand.vmem [shape: f32[2,4,256], index: 0, kind: input, shape index: {}]   ;;  %s1527_s1 = inlined_call_operand.vmem [shape: f32[4,1], index: 1, kind: input, shape index: {}]   ;;  %s1528_s2 = inlined_call_operand.vmem [shape: f32[4,1], index: 2, kind: input, shape index: {}]   ;;  %s1529_s4 = inlined_call_operand.vmem [shape: f32[8,1], index: 4, kind: input, shape index: {}]   ;;  %s1530_s9 = inlined_call_operand.vmem [shape: f32[72,512], index: 9, kind: input, shape index: {}, may-alias: {9,10}]   ;;  %s1531_s3 = inlined_call_operand.vmem [shape: f32[8,72], index: 3, kind: input, shape index: {}]   ;;  %s1532_s6 = inlined_call_operand.vmem [shape: f32[8,1], index: 6, kind: input, shape index: {}]   ;;  %s1533_s5 = inlined_call_operand.vmem [shape: f32[8,1], index: 5, kind: input, shape index: {}]   ;;  %s1534_s8 = inlined_call_operand.vmem [shape: f32[4,1], index: 8, kind: input, shape index: {}]   ;;  %s1535_s10 = inlined_call_operand.vmem [shape: f32[72,512], index: 10, kind: input, shape index: {}, may-alias: {9,10}]   ;;  %s1536_s7 = inlined_call_operand.vmem [shape: f32[4,72], index: 7, kind: input, shape index: {}]   ;;  %s1537_s11 = inlined_call_operand.vmem [shape: f32[2,4,256], index: 11, kind: output, shape index: {}]  }
   0x1   :  { %v38_v0 = vld [vmem:[%s1526_s0] sm:$0xff]  ;;  %v824_v1 = vld [vmem:[%s1526_s0 + $0x8] sm:$0xff]  ;;  %840 = vset.pattern.permute.xlu1 %v850_v28  ;;  %841 = vset.pattern.permute.xlu0 %v850_v28  ;;  %s855_s27 = smov 1   ;;  %s856_s28 = smov 15   ;;  %vm292_vm9 = vcmask 588800  }
   0x2   :  { %v926_v2 = vcombine.high %v38_v0, %v38_v0  ;;  %v928_v3 = vcombine.high %v824_v1, %v824_v1  ;;  %v48_v4 = vsel %vm47_vm0, %v38_v0, 0.0  ;;  %v51_v6 = vsel %vm47_vm0, %v824_v1, 0.0  ;;  %v76_v32 = vld [vmem:[%s1527_s1] sm:$0xf]  ;;  %s851_s1 = smov 111   ;;  %s857_s29 = smov 16   ;;  %360 = vmatprep.mubr.f32.mxu0 %v859_v54  ;;  %431 = vmatprep.mubr.f32.mxu1 %v859_v54 }
   0x3   :  { %v89_v35 = vld [vmem:[%s1528_s2] sm:$0xf]  ;;  %s852_s2 = smov 113   ;;  %s858_s30 = smov 17   ;;  %v1029_v57 = vand.u32 127, %v115_v56  ;;  %v246_v58 = vld [vmem:[%s1530_s9 + $0x108] sm:$0xff] }
   0x4   :  { %v49_v5 = vsel %vm47_vm0, %v926_v2, 0.0  ;;  %v53_v8 = vsel %vm47_vm0, %v928_v3, 0.0  ;;  %v286_v55 = vld [vmem:[%s1529_s4] sm:$0xff] }
   0x5   :  { %v50_v7 = vadd.f32 %v49_v5, %v48_v4  ;;  %vm208_vm1 = vcmp.lt.s32.totalorder %v1029_v57, 111  ;;  %v245_v63 = vld [vmem:[%s1530_s9 + $0x100] sm:$0xff]  ;;  %vm195_vm2 = vcmp.lt.s32.totalorder %v1029_v57, 112  ;;  %vm182_vm3 = vcmp.lt.s32.totalorder %v1029_v57, 113 }
   0x6   :  { %vm169_vm4 = vcmp.lt.s32.totalorder %v1029_v57, 127  ;;  %vm156_vm5 = vcmp.lt.s32.totalorder %v1029_v57, 1  ;;  %vm143_vm6 = vcmp.lt.s32.totalorder %v1029_v57, 15  ;;  %vm130_vm7 = vcmp.lt.s32.totalorder %v1029_v57, 16 }
   0x7   :  { %v52_v9 = vadd.f32 %v51_v6, %v50_v7  ;;  %vm117_vm8 = vcmp.lt.s32.totalorder %v1029_v57, 17  ;;  %v848_v57 = vld [vmem:[%s1526_s0] sm:$0xff] }
   0x9   :  { %v54_v10 = vadd.f32 %v53_v8, %v52_v9  ;;  %v242_v8 = vld [vmem:[%s1530_s9 + $0xe8] sm:$0xff] }
   0xb   :  { %55 = vadd.xlane.f32.xlu0 %v54_v10 }
  0x94   :  { %v56_v11 = vpop.xlane.xlu0 %55 }
  0x95   :  { %v57_v12 = vmul.f32 0.001953125, %v56_v11 }
  0x97   :  { %v58_v13 = vsub.f32 %v38_v0, %v57_v12  ;;  %v59_v14 = vsub.f32 %v926_v2, %v57_v12  ;;  %v60_v15 = vsub.f32 %v824_v1, %v57_v12  ;;  %v61_v16 = vsub.f32 %v928_v3, %v57_v12 }
  0x99   :  { %v62_v17 = vmul.f32 %v58_v13, %v58_v13  ;;  %v63_v18 = vmul.f32 %v59_v14, %v59_v14  ;;  %v64_v19 = vmul.f32 %v60_v15, %v60_v15  ;;  %v65_v20 = vmul.f32 %v61_v16, %v61_v16 }
  0x9b   :  { %v66_v21 = vsel %vm47_vm0, %v62_v17, 0.0  ;;  %v67_v22 = vsel %vm47_vm0, %v63_v18, 0.0  ;;  %v69_v24 = vsel %vm47_vm0, %v64_v19, 0.0  ;;  %v71_v26 = vsel %vm47_vm0, %v65_v20, 0.0  ;;  %v237_v18 = vld [vmem:[%s1530_s9 + $0xc0] sm:$0xff]  ;;  %v238_v19 = vld [vmem:[%s1530_s9 + $0xc8] sm:$0xff] }
  0x9c   :  { %v68_v23 = vadd.f32 %v67_v22, %v66_v21 }
  0x9e   :  { %v70_v25 = vadd.f32 %v69_v24, %v68_v23 }
  0xa0   :  { %v72_v27 = vadd.f32 %v71_v26, %v70_v25  ;;  %v248_v26 = vld [vmem:[%s1530_s9 + $0x118] sm:$0xff] }
  0xa2   :  { %73 = vadd.xlane.f32.xlu0 %v72_v27  ;;  %v247_v27 = vld [vmem:[%s1530_s9 + $0x110] sm:$0xff] }
 0x12b   :  { %v74_v29 = vpop.xlane.xlu0 %73 }
 0x12c   :  { %v75_v30 = vmul.f32 0.001953125, %v74_v29 }
 0x12e   :  { %v77_v31 = vadd.f32 1e-05, %v75_v30 }
 0x130   :  { %844 = vrsqrt.f32 %v77_v31 }
 0x13d   :  { %v845_v33 = vpop.eup %844 }
 0x13e   :  { %v79_v34 = vmul.f32 %v845_v33, %v76_v32 }
 0x140   :  { %82 = vperm.xlu1 %840, %v79_v34   ;;  %v233_v34 = vld [vmem:[%s1530_s9 + $0xa0] sm:$0xff] }
 0x144   :  { %92 = vperm.xlu1 %840, %v89_v35   ;;  %v234_v35 = vld [vmem:[%s1530_s9 + $0xa8] sm:$0xff] }
 0x1bb   :  { %v83_v36 = vpop.permute.xlu1 %82 }
 0x1bc   :  { %v85_v37 = vmul.f32 %v83_v36, %v58_v13  ;;  %v86_v38 = vmul.f32 %v83_v36, %v59_v14  ;;  %v87_v39 = vmul.f32 %v83_v36, %v60_v15  ;;  %v88_v50 = vmul.f32 %v83_v36, %v61_v16  ;;  %v241_v13 = vld [vmem:[%s1530_s9 + $0xe0] sm:$0xff] }
 0x1bf   :  { %v93_v40 = vpop.permute.xlu1 %92 }
 0x1c0   :  { %v95_v41 = vadd.f32 %v93_v40, %v85_v37  ;;  %v96_v42 = vadd.f32 %v93_v40, %v86_v38  ;;  %v97_v43 = vadd.f32 %v93_v40, %v87_v39  ;;  %v98_v51 = vadd.f32 %v93_v40, %v88_v50  ;;  %v230_v39 = vld [vmem:[%s1530_s9 + $0x88] sm:$0xff] }
 0x1c2   :  { %v100_v44 = vmax.f32 %v96_v42, 0.0  ;;  %v101_v45 = vmax.f32 %v97_v43, 0.0  ;;  %v99_v46 = vmax.f32 %v95_v41, 0.0  ;;  %v102_v52 = vmax.f32 %v98_v51, 0.0  ;;  %v229_v43 = vld [vmem:[%s1530_s9 + $0x80] sm:$0xff] }
 0x1c4   :  { %v949_v47 = vsel %vm47_vm0, %v100_v44, 0.0  ;;  %v952_v48 = vsel %vm47_vm0, %v101_v45, 0.0  ;;  %v959_v49 = vsel %vm47_vm0, %v99_v46, 0.0  ;;  %v982_v53 = vsel %vm47_vm0, %v102_v52, 0.0  ;;  %v243_v44 = vld [vmem:[%s1530_s9 + $0xf0] sm:$0xff]  ;;  %v244_v45 = vld [vmem:[%s1530_s9 + $0xf8] sm:$0xff] }
 0x1c5   :  { %204 = vrot.lane.b32.xlu1 %v952_v48, %s851_s1  ;;  %202 = vrot.lane.b32.xlu0 %v949_v47, %s851_s1  ;;  %v266_v50 = vmul.f32 %v230_v39, %v949_v47 }
 0x1c9   :  { %178 = vrot.lane.b32.xlu0 %v952_v48, %s852_s2  ;;  %200 = vrot.lane.b32.xlu1 %v959_v49, %s851_s1 }
 0x1cd   :  { %174 = vrot.lane.b32.xlu0 %v959_v49, %s852_s2  ;;  %189 = vrot.lane.b32.xlu1 %v949_v47, %s853_s25 }
 0x1d1   :  { %165 = vrot.lane.b32.xlu0 %v952_v48, %s854_s26  ;;  %191 = vrot.lane.b32.xlu1 %v952_v48, %s853_s25 }
 0x1d5   :  { %161 = vrot.lane.b32.xlu0 %v959_v49, %s854_s26  ;;  %187 = vrot.lane.b32.xlu1 %v959_v49, %s853_s25 }
 0x1d9   :  { %148 = vrot.lane.b32.xlu0 %v959_v49, %s855_s27  ;;  %176 = vrot.lane.b32.xlu1 %v949_v47, %s852_s2 }
 0x1dd   :  { %167 = vrot.lane.b32.xlu0 %v982_v53, %s854_s26  ;;  %206 = vrot.lane.b32.xlu1 %v982_v53, %s851_s1 }
 0x1e1   :  { %135 = vrot.lane.b32.xlu0 %v959_v49, %s856_s28  ;;  %163 = vrot.lane.b32.xlu1 %v949_v47, %s854_s26 }
 0x1e5   :  { %141 = vrot.lane.b32.xlu0 %v982_v53, %s856_s28  ;;  %193 = vrot.lane.b32.xlu1 %v982_v53, %s853_s25 }
 0x1e9   :  { %124 = vrot.lane.b32.xlu0 %v949_v47, %s857_s29  ;;  %180 = vrot.lane.b32.xlu1 %v982_v53, %s852_s2 }
 0x1ed   :  { %128 = vrot.lane.b32.xlu0 %v982_v53, %s857_s29  ;;  %150 = vrot.lane.b32.xlu1 %v949_v47, %s855_s27 }
 0x1f1   :  { %109 = vrot.lane.b32.xlu0 %v949_v47, %s858_s30  ;;  %154 = vrot.lane.b32.xlu1 %v982_v53, %s855_s27 }
 0x1f5   :  { %113 = vrot.lane.b32.xlu0 %v982_v53, %s858_s30  ;;  %137 = vrot.lane.b32.xlu1 %v949_v47, %s856_s28  ;;  %v240_v47 = vld [vmem:[%s1530_s9 + $0xd8] sm:$0xff] }
 0x1f9   :  { %111 = vrot.lane.b32.xlu0 %v952_v48, %s858_s30  ;;  %122 = vrot.lane.b32.xlu1 %v959_v49, %s857_s29 }
 0x1fd   :  { %152 = vrot.lane.b32.xlu1 %v952_v48, %s855_s27 }
 0x201   :  { %107 = vrot.lane.b32.xlu1 %v959_v49, %s858_s30 }
 0x205   :  { %139 = vrot.lane.b32.xlu1 %v952_v48, %s856_s28 }
 0x209   :  { %126 = vrot.lane.b32.xlu1 %v952_v48, %s857_s29 }
 0x20d   :  { %289 = vperm.xlu1 %840, %v286_v55   ;;  %v265_v55 = vmul.f32 %v229_v43, %v959_v49  ;;  %v236_v49 = vld [vmem:[%s1530_s9 + $0xb8] sm:$0xff]  ;;  %v213_v43 = vld [vmem:[%s1530_s9] sm:$0xff] }
 0x237   :  { %v205_v59 = vpop.permute.xlu1 %204  ;;  %v203_v60 = vpop.permute.xlu0 %202 }
 0x238   :  { %v210_v61 = vsel %vm208_vm1, %v203_v60, %v205_v59 }
 0x239   :  { %v282_v62 = vmul.f32 %v246_v58, %v210_v61 }
 0x23b   :  { %310 = vmatprep.subr.mxu0 %v282_v62  ;;  %v1040_v0 = vpop.permute.xlu0 %178  ;;  %v201_v1 = vpop.permute.xlu1 %200 }
 0x23c   :  { %v211_v4 = vsel %vm208_vm1, %v201_v1, %v203_v60 }
 0x23d   :  { %v281_v5 = vmul.f32 %v245_v63, %v211_v4  ;;  %v235_v4 = vld [vmem:[%s1530_s9 + $0xb0] sm:$0xff] }
 0x23f   :  { %v1044_v6 = vpop.permute.xlu0 %174  ;;  %311 = vmatpush1.msra.mxu0 %v281_v5  ;;  %v190_v7 = vpop.permute.xlu1 %189 }
 0x243   :  { %v1050_v9 = vpop.permute.xlu0 %165  ;;  %v192_v10 = vpop.permute.xlu1 %191 }
 0x244   :  { %v197_v11 = vsel %vm195_vm2, %v190_v7, %v192_v10 }
 0x245   :  { %v278_v12 = vmul.f32 %v242_v8, %v197_v11 }
 0x247   :  { %v162_v14 = vpop.permute.xlu0 %161  ;;  %312 = vmatprep.subr.mxu0 %v278_v12  ;;  %v188_v15 = vpop.permute.xlu1 %187  ;;  %v231_v12 = vld [vmem:[%s1530_s9 + $0x90] sm:$0xff] }
 0x248   :  { %v198_v16 = vsel %vm195_vm2, %v188_v15, %v190_v7 }
 0x249   :  { %v277_v17 = vmul.f32 %v241_v13, %v198_v16 }
 0x24b   :  { %v1066_v20 = vpop.permute.xlu0 %148  ;;  %313 = vmatpush1.msra.mxu0 %v277_v17  ;;  %v177_v21 = vpop.permute.xlu1 %176  ;;  %v225_v17 = vld [vmem:[%s1530_s9 + $0x60] sm:$0xff] }
 0x24c   :  { %v184_v22 = vsel %vm182_vm3, %v177_v21, %v1040_v0  ;;  %v185_v23 = vsel %vm182_vm3, %v1044_v6, %v177_v21 }
 0x24d   :  { %v273_v24 = vmul.f32 %v237_v18, %v185_v23  ;;  %v274_v25 = vmul.f32 %v238_v19, %v184_v22  ;;  %v267_v18 = vmul.f32 %v231_v12, %v952_v48  ;;  %v221_v23 = vld [vmem:[%s1530_s9 + $0x40] sm:$0xff] }
 0x24f   :  { %v168_v28 = vpop.permute.xlu0 %167  ;;  %314 = vmatprep.subr.mxu0 %v274_v25  ;;  %v207_v29 = vpop.permute.xlu1 %206 }
 0x250   :  { %v209_v30 = vsel %vm208_vm1, %v205_v59, %v207_v29  ;;  %315 = vmatpush1.msra.mxu0 %v273_v24  ;;  %v212_v31 = vsel %vm208_vm1, %v207_v29, %v201_v1  ;;  %v239_v59 = vld [vmem:[%s1530_s9 + $0xd0] sm:$0xff]  ;;  %v173_v62 = vsel %vm169_vm4, %v168_v28, %v162_v14  ;;  %v170_v5 = vsel %vm169_vm4, %v1050_v9, %v168_v28  ;;  %v217_v28 = vld [vmem:[%s1530_s9 + $0x20] sm:$0xff]  ;;  %v218_v29 = vld [vmem:[%s1530_s9 + $0x28] sm:$0xff] }
 0x251   :  { %v284_v32 = vmul.f32 %v248_v26, %v212_v31  ;;  %v283_v33 = vmul.f32 %v247_v27, %v209_v30 }
 0x253   :  { %381 = vmatprep.subr.mxu1 %v284_v32  ;;  %v164_v36 = vpop.permute.xlu1 %163  ;;  %v136_v40 = vpop.permute.xlu0 %135 }
 0x254   :  { %v171_v37 = vsel %vm169_vm4, %v164_v36, %v1050_v9  ;;  %v172_v38 = vsel %vm169_vm4, %v162_v14, %v164_v36  ;;  %382 = vmatpush1.msra.mxu1 %v283_v33  ;;  %v271_v9 = vmul.f32 %v235_v4, %v170_v5  ;;  %v227_v36 = vld [vmem:[%s1530_s9 + $0x70] sm:$0xff]  ;;  %v220_v5 = vld [vmem:[%s1530_s9 + $0x38] sm:$0xff] }
 0x255   :  { %v269_v41 = vmul.f32 %v233_v34, %v172_v38  ;;  %v270_v42 = vmul.f32 %v234_v35, %v171_v37  ;;  %v228_v37 = vld [vmem:[%s1530_s9 + $0x78] sm:$0xff]  ;;  %v219_v4 = vld [vmem:[%s1530_s9 + $0x30] sm:$0xff] }
 0x257   :  { %316 = vmatprep.subr.mxu0 %v270_v42  ;;  %v194_v46 = vpop.permute.xlu1 %193  ;;  %v1120_v60 = vpop.permute.xlu0 %141 }
 0x258   :  { %v196_v51 = vsel %vm195_vm2, %v192_v10, %v194_v46  ;;  %v199_v52 = vsel %vm195_vm2, %v194_v46, %v188_v15  ;;  %317 = vmatpush1.msra.mxu0 %v269_v41  ;;  %v272_v10 = vmul.f32 %v236_v49, %v173_v62  ;;  %v147_v48 = vsel %vm143_vm6, %v1120_v60, %v136_v40 }
 0x259   :  { %v279_v56 = vmul.f32 %v243_v44, %v196_v51  ;;  %v280_v58 = vmul.f32 %v244_v45, %v199_v52  ;;  %318 = vmatprep.subr.mxu0 %v266_v50  ;;  %v257_v27 = vmul.f32 %v221_v23, %v147_v48  ;;  %v214_v44 = vld [vmem:[%s1530_s9 + $0x8] sm:$0xff] }
 0x25a   :  { %319 = vmatpush1.msra.mxu0 %v265_v55 }
 0x25b   :  { %383 = vmatprep.subr.mxu1 %v280_v58  ;;  %v181_v61 = vpop.permute.xlu1 %180  ;;  %v1152_v14 = vpop.permute.xlu0 %124  ;;  %v224_v58 = vld [vmem:[%s1530_s9 + $0x58] sm:$0xff] }
 0x25c   :  { %v183_v63 = vsel %vm182_vm3, %v1040_v0, %v181_v61  ;;  %v186_v1 = vsel %vm182_vm3, %v181_v61, %v1044_v6  ;;  %384 = vmatpush1.msra.mxu1 %v279_v56  ;;  %v226_v0 = vld [vmem:[%s1530_s9 + $0x68] sm:$0xff]  ;;  %v232_v6 = vld [vmem:[%s1530_s9 + $0x98] sm:$0xff]  ;;  %v223_v56 = vld [vmem:[%s1530_s9 + $0x50] sm:$0xff] }
 0x25d   :  { %v275_v7 = vmul.f32 %v239_v59, %v183_v63  ;;  %v276_v8 = vmul.f32 %v240_v47, %v186_v1  ;;  %v268_v16 = vmul.f32 %v232_v6, %v982_v53  ;;  %v222_v53 = vld [vmem:[%s1530_s9 + $0x48] sm:$0xff]  ;;  %v285_v59 = vld [vmem:[%s1531_s3] sm:$0xff] }
 0x25f   :  { %385 = vmatprep.subr.mxu1 %v276_v8  ;;  %v151_v11 = vpop.permute.xlu1 %150  ;;  %v129_v24 = vpop.permute.xlu0 %128 }
 0x260   :  { %v159_v13 = vsel %vm156_vm5, %v1066_v20, %v151_v11  ;;  %386 = vmatpush1.msra.mxu1 %v275_v7  ;;  %v216_v7 = vld [vmem:[%s1530_s9 + $0x18] sm:$0xff] }
 0x261   :  { %v262_v15 = vmul.f32 %v226_v0, %v159_v13  ;;  %387 = vmatprep.subr.mxu1 %v272_v10  ;;  %v215_v10 = vld [vmem:[%s1530_s9 + $0x10] sm:$0xff] }
 0x262   :  { %388 = vmatpush1.msra.mxu1 %v271_v9 }
 0x263   :  { %389 = vmatprep.subr.mxu1 %v268_v16  ;;  %v155_v19 = vpop.permute.xlu1 %154  ;;  %320 = vmatprep.subr.mxu0 %v262_v15  ;;  %v110_v33 = vpop.permute.xlu0 %109 }
 0x264   :  { %v160_v21 = vsel %vm156_vm5, %v155_v19, %v1066_v20  ;;  %390 = vmatpush1.msra.mxu1 %v267_v18 }
 0x265   :  { %v261_v22 = vmul.f32 %v225_v17, %v160_v21 }
 0x267   :  { %v138_v25 = vpop.permute.xlu1 %137  ;;  %321 = vmatpush1.msra.mxu0 %v261_v22  ;;  %v114_v45 = vpop.permute.xlu0 %113 }
 0x268   :  { %v146_v20 = vsel %vm143_vm6, %v136_v40, %v138_v25 }
 0x269   :  { %v258_v26 = vmul.f32 %v222_v53, %v146_v20 }
 0x26b   :  { %v123_v30 = vpop.permute.xlu1 %122  ;;  %322 = vmatprep.subr.mxu0 %v258_v26  ;;  %v112_v62 = vpop.permute.xlu0 %111 }
 0x26c   :  { %v133_v31 = vsel %vm130_vm7, %v123_v30, %v1152_v14  ;;  %v134_v32 = vsel %vm130_vm7, %v129_v24, %v123_v30  ;;  %323 = vmatpush1.msra.mxu0 %v257_v27  ;;  %v118_v8 = vsel %vm117_vm8, %v112_v62, %v114_v45 }
 0x26d   :  { %v253_v34 = vmul.f32 %v217_v28, %v134_v32  ;;  %v254_v35 = vmul.f32 %v218_v29, %v133_v31  ;;  %v252_v13 = vmul.f32 %v216_v7, %v118_v8  ;;  %v614_v7 = vld [vmem:[%s1535_s10 + $0x108] sm:$0xff]  ;;  %v613_v8 = vld [vmem:[%s1535_s10 + $0x100] sm:$0xff] }
 0x26f   :  { %v153_v38 = vpop.permute.xlu1 %152  ;;  %324 = vmatprep.subr.mxu0 %v254_v35 }
 0x270   :  { %v157_v39 = vsel %vm156_vm5, %v153_v38, %v155_v19  ;;  %v158_v40 = vsel %vm156_vm5, %v151_v11, %v153_v38  ;;  %325 = vmatpush1.msra.mxu0 %v253_v34  ;;  %v119_v11 = vsel %vm117_vm8, %v110_v33, %v112_v62 }
 0x271   :  { %v263_v41 = vmul.f32 %v227_v36, %v158_v40  ;;  %v264_v42 = vmul.f32 %v228_v37, %v157_v39  ;;  %v251_v15 = vmul.f32 %v215_v10, %v119_v11  ;;  %v471_v37 = vld [vmem:[%s1532_s6] sm:$0xff] }
 0x273   :  { %391 = vmatprep.subr.mxu1 %v264_v42  ;;  %v108_v46 = vpop.permute.xlu1 %107 }
 0x274   :  { %v120_v50 = vsel %vm117_vm8, %v108_v46, %v110_v33  ;;  %v121_v51 = vsel %vm117_vm8, %v114_v45, %v108_v46  ;;  %392 = vmatpush1.msra.mxu1 %v263_v41  ;;  %v458_v41 = vld [vmem:[%s1533_s5] sm:$0xff] }
 0x275   :  { %v249_v52 = vmul.f32 %v213_v43, %v121_v51  ;;  %v250_v55 = vmul.f32 %v214_v44, %v120_v50 }
 0x277   :  { %v140_v47 = vpop.permute.xlu1 %139  ;;  %326 = vmatprep.subr.mxu0 %v250_v55 }
 0x278   :  { %v144_v61 = vsel %vm143_vm6, %v140_v47, %v1120_v60  ;;  %v145_v49 = vsel %vm143_vm6, %v138_v25, %v140_v47  ;;  %327 = vmatpush1.msra.mxu0 %v249_v52 }
 0x279   :  { %v259_v63 = vmul.f32 %v223_v56, %v145_v49  ;;  %v260_v1 = vmul.f32 %v224_v58, %v144_v61  ;;  %825 = vmatmul.mubr.msk.f32.vlgmr.msra.gmra.mxu0 %vm292_vm9, %v285_v59 }
 0x27a   :  { %727 = vmatprep.mubr.f32.mxu0 %v859_v54 }
 0x27b   :  { %393 = vmatprep.subr.mxu1 %v260_v1  ;;  %v127_v60 = vpop.permute.xlu1 %126 }
 0x27c   :  { %v131_v0 = vsel %vm130_vm7, %v127_v60, %v129_v24  ;;  %v132_v6 = vsel %vm130_vm7, %v1152_v14, %v127_v60  ;;  %394 = vmatpush1.msra.mxu1 %v259_v63  ;;  %v654_v63 = vld [vmem:[%s1534_s8] sm:$0xf] }
 0x27d   :  { %v255_v12 = vmul.f32 %v219_v4, %v132_v6  ;;  %v256_v9 = vmul.f32 %v220_v5, %v131_v0 }
 0x27f   :  { %395 = vmatprep.subr.mxu1 %v256_v9 }
 0x280   :  { %396 = vmatpush1.msra.mxu1 %v255_v12 }
 0x281   :  { %397 = vmatprep.subr.mxu1 %v252_v13  ;;  %v615_v13 = vld [vmem:[%s1535_s10 + $0x110] sm:$0xff] }
 0x282   :  { %398 = vmatpush1.msra.mxu1 %v251_v15  ;;  %v616_v15 = vld [vmem:[%s1535_s10 + $0x118] sm:$0xff] }
 0x283   :  { %826 = vmatmul.mubr.msk.f32.vlgmr.msra.gmra.mxu1 %vm292_vm9, %v285_v59 }
 0x284   :  { %798 = vmatprep.mubr.f32.mxu1 %v859_v54 }
 0x288   :  { %v290_v17 = vpop.permute.xlu1 %289 }
 0x339   :  { %v362_v14 = vpop.f32.mrf.mxu0 }
 0x33a   :  { %v363_v19 = vadd.f32 %v362_v14, %v290_v17 }
 0x33b   :  { %v364_v16 = vpop.f32.mrf.mxu0 }
 0x33c   :  { %v365_v18 = vadd.f32 %v364_v16, %v290_v17 }
 0x33e   :  { %v438_v22 = vadd.f32 %v365_v18, %v363_v19 }
 0x343   :  { %v433_v21 = vpop.f32.mrf.mxu1 }
 0x344   :  { %v434_v53 = vadd.f32 %v433_v21, %v290_v17 }
 0x345   :  { %v435_v23 = vpop.f32.mrf.mxu1 }
 0x346   :  { %v439_v48 = vadd.f32 %v438_v22, %v434_v53  ;;  %v436_v24 = vadd.f32 %v435_v23, %v290_v17  ;;  %v612_v22 = vld [vmem:[%s1535_s10 + $0xf8] sm:$0xff] }
 0x348   :  { %v440_v25 = vadd.f32 %v439_v48, %v436_v24 }
 0x34a   :  { %441 = vadd.xlane.f32.xlu0 %v440_v25  ;;  %v610_v25 = vld [vmem:[%s1535_s10 + $0xe8] sm:$0xff] }
 0x3d3   :  { %v442_v20 = vpop.xlane.xlu0 %441 }
 0x3d4   :  { %v443_v26 = vmul.f32 0.001953125, %v442_v20  ;;  %v611_v20 = vld [vmem:[%s1535_s10 + $0xf0] sm:$0xff] }
 0x3d6   :  { %v444_v27 = vsub.f32 %v363_v19, %v443_v26  ;;  %v445_v28 = vsub.f32 %v365_v18, %v443_v26  ;;  %v446_v29 = vsub.f32 %v434_v53, %v443_v26  ;;  %v447_v30 = vsub.f32 %v436_v24, %v443_v26  ;;  %v609_v26 = vld [vmem:[%s1535_s10 + $0xe0] sm:$0xff] }
 0x3d8   :  { %v448_v54 = vmul.f32 %v444_v27, %v444_v27  ;;  %v449_v31 = vmul.f32 %v445_v28, %v445_v28  ;;  %v450_v32 = vmul.f32 %v446_v29, %v446_v29  ;;  %v451_v34 = vmul.f32 %v447_v30, %v447_v30 }
 0x3da   :  { %v452_v33 = vadd.f32 %v449_v31, %v448_v54 }
 0x3dc   :  { %v453_v35 = vadd.f32 %v452_v33, %v450_v32 }
 0x3de   :  { %v454_v36 = vadd.f32 %v453_v35, %v451_v34  ;;  %v608_v34 = vld [vmem:[%s1535_s10 + $0xd8] sm:$0xff] }
 0x3e0   :  { %455 = vadd.xlane.f32.xlu1 %v454_v36 }
 0x3f1   :  { %474 = vperm.xlu1 %840, %v471_v37  }
 0x469   :  { %v456_v38 = vpop.xlane.xlu1 %455 }
 0x46a   :  { %v457_v39 = vmul.f32 0.001953125, %v456_v38 }
 0x46c   :  { %v459_v40 = vadd.f32 1e-05, %v457_v39  ;;  %v606_v39 = vld [vmem:[%s1535_s10 + $0xc8] sm:$0xff] }
 0x46d   :  { %v475_v51 = vpop.permute.xlu1 %474 }
 0x46e   :  { %846 = vrsqrt.f32 %v459_v40  ;;  %v607_v40 = vld [vmem:[%s1535_s10 + $0xd0] sm:$0xff] }
 0x47b   :  { %v847_v42 = vpop.eup %846 }
 0x47c   :  { %v461_v43 = vmul.f32 %v847_v42, %v458_v41  ;;  %v605_v41 = vld [vmem:[%s1535_s10 + $0xc0] sm:$0xff] }
 0x47e   :  { %464 = vperm.xlu0 %841, %v461_v43  }
 0x4f9   :  { %v465_v44 = vpop.permute.xlu0 %464 }
 0x4fa   :  { %v467_v45 = vmul.f32 %v465_v44, %v444_v27  ;;  %v468_v46 = vmul.f32 %v465_v44, %v445_v28  ;;  %v470_v50 = vmul.f32 %v465_v44, %v447_v30  ;;  %v469_v56 = vmul.f32 %v465_v44, %v446_v29 }
 0x4fc   :  { %v477_v52 = vadd.f32 %v475_v51, %v467_v45  ;;  %v478_v55 = vadd.f32 %v475_v51, %v468_v46  ;;  %v480_v58 = vadd.f32 %v475_v51, %v470_v50  ;;  %v479_v61 = vadd.f32 %v475_v51, %v469_v56 }
 0x4fe   :  { %v1252_v59 = vmax.f32 %v477_v52, 0.0  ;;  %v1254_v47 = vmax.f32 %v478_v55, 0.0  ;;  %v1260_v49 = vmax.f32 %v480_v58, 0.0  ;;  %v1266_v62 = vmax.f32 %v479_v61, 0.0  ;;  %v604_v55 = vld [vmem:[%s1535_s10 + $0xb8] sm:$0xff] }
 0x500   :  { %559 = vrot.lane.b32.xlu0 %v1254_v47, %s853_s25  ;;  %569 = vrot.lane.b32.xlu1 %v1252_v59, %s851_s1 }
 0x504   :  { %563 = vrot.lane.b32.xlu0 %v1260_v49, %s853_s25  ;;  %571 = vrot.lane.b32.xlu1 %v1254_v47, %s851_s1 }
 0x508   :  { %547 = vrot.lane.b32.xlu0 %v1254_v47, %s852_s2  ;;  %573 = vrot.lane.b32.xlu1 %v1266_v62, %s851_s1 }
 0x50c   :  { %551 = vrot.lane.b32.xlu0 %v1260_v49, %s852_s2  ;;  %575 = vrot.lane.b32.xlu1 %v1260_v49, %s851_s1 }
 0x510   :  { %535 = vrot.lane.b32.xlu0 %v1254_v47, %s854_s26  ;;  %557 = vrot.lane.b32.xlu1 %v1252_v59, %s853_s25 }
 0x514   :  { %539 = vrot.lane.b32.xlu0 %v1260_v49, %s854_s26  ;;  %561 = vrot.lane.b32.xlu1 %v1266_v62, %s853_s25 }
 0x518   :  { %523 = vrot.lane.b32.xlu0 %v1254_v47, %s855_s27  ;;  %545 = vrot.lane.b32.xlu1 %v1252_v59, %s852_s2 }
 0x51c   :  { %527 = vrot.lane.b32.xlu0 %v1260_v49, %s855_s27  ;;  %549 = vrot.lane.b32.xlu1 %v1266_v62, %s852_s2 }
 0x520   :  { %511 = vrot.lane.b32.xlu0 %v1254_v47, %s856_s28  ;;  %533 = vrot.lane.b32.xlu1 %v1252_v59, %s854_s26 }
 0x524   :  { %515 = vrot.lane.b32.xlu0 %v1260_v49, %s856_s28  ;;  %537 = vrot.lane.b32.xlu1 %v1266_v62, %s854_s26 }
 0x528   :  { %499 = vrot.lane.b32.xlu0 %v1254_v47, %s857_s29  ;;  %521 = vrot.lane.b32.xlu1 %v1252_v59, %s855_s27 }
 0x52c   :  { %503 = vrot.lane.b32.xlu0 %v1260_v49, %s857_s29  ;;  %525 = vrot.lane.b32.xlu1 %v1266_v62, %s855_s27 }
 0x530   :  { %487 = vrot.lane.b32.xlu0 %v1254_v47, %s858_s30  ;;  %509 = vrot.lane.b32.xlu1 %v1252_v59, %s856_s28 }
 0x534   :  { %491 = vrot.lane.b32.xlu0 %v1260_v49, %s858_s30  ;;  %513 = vrot.lane.b32.xlu1 %v1266_v62, %s856_s28 }
 0x538   :  { %497 = vrot.lane.b32.xlu1 %v1252_v59, %s857_s29 }
 0x53c   :  { %501 = vrot.lane.b32.xlu1 %v1266_v62, %s857_s29 }
 0x540   :  { %485 = vrot.lane.b32.xlu1 %v1252_v59, %s858_s30 }
 0x544   :  { %489 = vrot.lane.b32.xlu1 %v1266_v62, %s858_s30 }
 0x548   :  { %657 = vperm.xlu1 %840, %v654_v63  }
 0x572   :  { %v560_v1 = vpop.permute.xlu0 %559  ;;  %v570_v4 = vpop.permute.xlu1 %569 }
 0x576   :  { %v564_v5 = vpop.permute.xlu0 %563  ;;  %v572_v60 = vpop.permute.xlu1 %571 }
 0x577   :  { %v579_v0 = vsel %vm208_vm1, %v570_v4, %v572_v60 }
 0x578   :  { %v649_v9 = vmul.f32 %v613_v8, %v579_v0  ;;  %v600_v8 = vld [vmem:[%s1535_s10 + $0x98] sm:$0xff] }
 0x57a   :  { %v548_v6 = vpop.permute.xlu0 %547  ;;  %v574_v10 = vpop.permute.xlu1 %573 }
 0x57b   :  { %v578_v11 = vsel %vm208_vm1, %v572_v60, %v574_v10 }
 0x57c   :  { %v650_v12 = vmul.f32 %v614_v7, %v578_v11  ;;  %v599_v11 = vld [vmem:[%s1535_s10 + $0x90] sm:$0xff] }
 0x57e   :  { %v552_v14 = vpop.permute.xlu0 %551  ;;  %677 = vmatprep.subr.mxu0 %v650_v12  ;;  %v576_v16 = vpop.permute.xlu1 %575 }
 0x57f   :  { %v577_v17 = vsel %vm208_vm1, %v574_v10, %v576_v16  ;;  %v580_v18 = vsel %vm208_vm1, %v576_v16, %v570_v4  ;;  %678 = vmatpush1.msra.mxu0 %v649_v9  ;;  %v603_v4 = vld [vmem:[%s1535_s10 + $0xb0] sm:$0xff]  ;;  %v598_v10 = vld [vmem:[%s1535_s10 + $0x88] sm:$0xff] }
 0x580   :  { %v651_v19 = vmul.f32 %v615_v13, %v577_v17  ;;  %v652_v21 = vmul.f32 %v616_v15, %v580_v18  ;;  %v597_v13 = vld [vmem:[%s1535_s10 + $0x80] sm:$0xff]  ;;  %v594_v16 = vld [vmem:[%s1535_s10 + $0x68] sm:$0xff]  ;;  %v636_v17 = vmul.f32 %v600_v8, %v1260_v49 }
 0x582   :  { %v536_v53 = vpop.permute.xlu0 %535  ;;  %748 = vmatprep.subr.mxu1 %v652_v21  ;;  %v558_v23 = vpop.permute.xlu1 %557  ;;  %v634_v21 = vmul.f32 %v598_v10, %v1254_v47  ;;  %v595_v47 = vld [vmem:[%s1535_s10 + $0x70] sm:$0xff] }
 0x583   :  { %v568_v48 = vsel %vm195_vm2, %v564_v5, %v558_v23  ;;  %749 = vmatpush1.msra.mxu1 %v651_v19  ;;  %v567_v27 = vsel %vm195_vm2, %v558_v23, %v560_v1 }
 0x584   :  { %v648_v24 = vmul.f32 %v612_v22, %v568_v48  ;;  %v645_v33 = vmul.f32 %v609_v26, %v567_v27  ;;  %v635_v22 = vmul.f32 %v599_v11, %v1266_v62  ;;  %v633_v48 = vmul.f32 %v597_v13, %v1252_v59  ;;  %v596_v62 = vld [vmem:[%s1535_s10 + $0x78] sm:$0xff] }
 0x585   :  { %v584_v13 = vld [vmem:[%s1535_s10 + $0x18] sm:$0xff] }
 0x586   :  { %v540_v28 = vpop.permute.xlu0 %539  ;;  %750 = vmatprep.subr.mxu1 %v648_v24  ;;  %v562_v29 = vpop.permute.xlu1 %561 }
 0x587   :  { %v565_v30 = vsel %vm195_vm2, %v562_v29, %v564_v5  ;;  %v566_v54 = vsel %vm195_vm2, %v560_v1, %v562_v29  ;;  %v602_v1 = vld [vmem:[%s1535_s10 + $0xa8] sm:$0xff]  ;;  %v601_v5 = vld [vmem:[%s1535_s10 + $0xa0] sm:$0xff] }
 0x588   :  { %v646_v31 = vmul.f32 %v610_v25, %v566_v54  ;;  %v647_v32 = vmul.f32 %v611_v20, %v565_v30  ;;  %v589_v29 = vld [vmem:[%s1535_s10 + $0x40] sm:$0xff]  ;;  %v590_v30 = vld [vmem:[%s1535_s10 + $0x48] sm:$0xff] }
 0x58a   :  { %v1370_v35 = vpop.permute.xlu0 %523  ;;  %679 = vmatprep.subr.mxu0 %v646_v31  ;;  %751 = vmatpush1.msra.mxu1 %v647_v32  ;;  %v546_v36 = vpop.permute.xlu1 %545 }
 0x58b   :  { %v556_v37 = vsel %vm182_vm3, %v552_v14, %v546_v36  ;;  %680 = vmatpush1.msra.mxu0 %v645_v33  ;;  %v555_v42 = vsel %vm182_vm3, %v546_v36, %v548_v6  ;;  %v592_v36 = vld [vmem:[%s1535_s10 + $0x58] sm:$0xff] }
 0x58c   :  { %v644_v38 = vmul.f32 %v608_v34, %v556_v37  ;;  %v641_v52 = vmul.f32 %v605_v41, %v555_v42 }
 0x58e   :  { %v528_v43 = vpop.permute.xlu0 %527  ;;  %752 = vmatprep.subr.mxu1 %v644_v38  ;;  %v550_v44 = vpop.permute.xlu1 %549 }
 0x58f   :  { %v553_v45 = vsel %vm182_vm3, %v550_v44, %v552_v14  ;;  %v554_v46 = vsel %vm182_vm3, %v548_v6, %v550_v44  ;;  %v593_v14 = vld [vmem:[%s1535_s10 + $0x60] sm:$0xff]  ;;  %v586_v44 = vld [vmem:[%s1535_s10 + $0x28] sm:$0xff] }
 0x590   :  { %v642_v50 = vmul.f32 %v606_v39, %v554_v46  ;;  %v643_v51 = vmul.f32 %v607_v40, %v553_v45 }
 0x592   :  { %681 = vmatprep.subr.mxu0 %v642_v50  ;;  %753 = vmatpush1.msra.mxu1 %v643_v51  ;;  %v534_v56 = vpop.permute.xlu1 %533  ;;  %v512_v61 = vpop.permute.xlu0 %511 }
 0x593   :  { %v544_v58 = vsel %vm169_vm4, %v540_v28, %v534_v56  ;;  %682 = vmatpush1.msra.mxu0 %v641_v52  ;;  %v543_v60 = vsel %vm169_vm4, %v534_v56, %v536_v53  ;;  %v587_v56 = vld [vmem:[%s1535_s10 + $0x30] sm:$0xff] }
 0x594   :  { %v640_v63 = vmul.f32 %v604_v55, %v544_v58  ;;  %v637_v15 = vmul.f32 %v601_v5, %v543_v60  ;;  %v588_v58 = vld [vmem:[%s1535_s10 + $0x38] sm:$0xff]  ;;  %v581_v60 = vld [vmem:[%s1535_s10] sm:$0xff] }
 0x596   :  { %754 = vmatprep.subr.mxu1 %v640_v63  ;;  %v538_v7 = vpop.permute.xlu1 %537  ;;  %v516_v18 = vpop.permute.xlu0 %515 }
 0x597   :  { %v541_v0 = vsel %vm169_vm4, %v538_v7, %v540_v28  ;;  %v542_v6 = vsel %vm169_vm4, %v536_v53, %v538_v7  ;;  %v582_v7 = vld [vmem:[%s1535_s10 + $0x8] sm:$0xff] }
 0x598   :  { %v638_v12 = vmul.f32 %v602_v1, %v542_v6  ;;  %v639_v9 = vmul.f32 %v603_v4, %v541_v0 }
 0x59a   :  { %683 = vmatprep.subr.mxu0 %v638_v12  ;;  %755 = vmatpush1.msra.mxu1 %v639_v9  ;;  %v522_v19 = vpop.permute.xlu1 %521  ;;  %v500_v26 = vpop.permute.xlu0 %499  ;;  %v583_v9 = vld [vmem:[%s1535_s10 + $0x10] sm:$0xff] }
 0x59b   :  { %v531_v53 = vsel %vm156_vm5, %v522_v19, %v1370_v35  ;;  %v532_v23 = vsel %vm156_vm5, %v528_v43, %v522_v19  ;;  %684 = vmatpush1.msra.mxu0 %v637_v15  ;;  %756 = vmatprep.subr.mxu1 %v636_v17  ;;  %v653_v15 = vld [vmem:[%s1536_s7] sm:$0xf] }
 0x59c   :  { %v629_v49 = vmul.f32 %v593_v14, %v532_v23  ;;  %v630_v24 = vmul.f32 %v594_v16, %v531_v53  ;;  %685 = vmatprep.subr.mxu0 %v634_v21  ;;  %757 = vmatpush1.msra.mxu1 %v635_v22 }
 0x59d   :  { %686 = vmatpush1.msra.mxu0 %v633_v48 }
 0x59e   :  { %v526_v25 = vpop.permute.xlu1 %525  ;;  %687 = vmatprep.subr.mxu0 %v630_v24  ;;  %v504_v37 = vpop.permute.xlu0 %503 }
 0x59f   :  { %v529_v20 = vsel %vm156_vm5, %v526_v25, %v528_v43  ;;  %v530_v59 = vsel %vm156_vm5, %v1370_v35, %v526_v25  ;;  %688 = vmatpush1.msra.mxu0 %v629_v49  ;;  %v591_v35 = vld [vmem:[%s1535_s10 + $0x50] sm:$0xff]  ;;  %v585_v43 = vld [vmem:[%s1535_s10 + $0x20] sm:$0xff] }
 0x5a0   :  { %v631_v27 = vmul.f32 %v595_v47, %v530_v59  ;;  %v632_v28 = vmul.f32 %v596_v62, %v529_v20 }
 0x5a2   :  { %758 = vmatprep.subr.mxu1 %v632_v28  ;;  %v510_v54 = vpop.permute.xlu1 %509  ;;  %v488_v51 = vpop.permute.xlu0 %487 }
 0x5a3   :  { %v519_v31 = vsel %vm143_vm6, %v510_v54, %v512_v61  ;;  %v520_v32 = vsel %vm143_vm6, %v516_v18, %v510_v54  ;;  %759 = vmatpush1.msra.mxu1 %v631_v27 }
 0x5a4   :  { %v625_v33 = vmul.f32 %v589_v29, %v520_v32  ;;  %v626_v34 = vmul.f32 %v590_v30, %v519_v31 }
 0x5a6   :  { %v514_v38 = vpop.permute.xlu1 %513  ;;  %689 = vmatprep.subr.mxu0 %v626_v34  ;;  %v492_v8 = vpop.permute.xlu0 %491 }
 0x5a7   :  { %v517_v39 = vsel %vm143_vm6, %v514_v38, %v516_v18  ;;  %v518_v40 = vsel %vm143_vm6, %v512_v61, %v514_v38  ;;  %690 = vmatpush1.msra.mxu0 %v625_v33 }
 0x5a8   :  { %v627_v41 = vmul.f32 %v591_v35, %v518_v40  ;;  %v628_v42 = vmul.f32 %v592_v36, %v517_v39 }
 0x5aa   :  { %760 = vmatprep.subr.mxu1 %v628_v42  ;;  %v498_v45 = vpop.permute.xlu1 %497 }
 0x5ab   :  { %v507_v46 = vsel %vm130_vm7, %v498_v45, %v500_v26  ;;  %v508_v50 = vsel %vm130_vm7, %v504_v37, %v498_v45  ;;  %761 = vmatpush1.msra.mxu1 %v627_v41 }
 0x5ac   :  { %v621_v52 = vmul.f32 %v585_v43, %v508_v50  ;;  %v622_v55 = vmul.f32 %v586_v44, %v507_v46 }
 0x5ae   :  { %v502_v61 = vpop.permute.xlu1 %501  ;;  %691 = vmatprep.subr.mxu0 %v622_v55 }
 0x5af   :  { %v505_v63 = vsel %vm130_vm7, %v502_v61, %v504_v37  ;;  %v506_v1 = vsel %vm130_vm7, %v500_v26, %v502_v61  ;;  %692 = vmatpush1.msra.mxu0 %v621_v52  ;;  %v849_v26 = vld [vmem:[%s1526_s0 + $0x8] sm:$0xff] }
 0x5b0   :  { %v623_v4 = vmul.f32 %v587_v56, %v506_v1  ;;  %v624_v5 = vmul.f32 %v588_v58, %v505_v63 }
 0x5b2   :  { %762 = vmatprep.subr.mxu1 %v624_v5  ;;  %v486_v0 = vpop.permute.xlu1 %485 }
 0x5b3   :  { %v495_v6 = vsel %vm117_vm8, %v486_v0, %v488_v51  ;;  %v496_v10 = vsel %vm117_vm8, %v492_v8, %v486_v0  ;;  %763 = vmatpush1.msra.mxu1 %v623_v4 }
 0x5b4   :  { %v617_v11 = vmul.f32 %v581_v60, %v496_v10  ;;  %v618_v12 = vmul.f32 %v582_v7, %v495_v6 }
 0x5b6   :  { %v490_v14 = vpop.permute.xlu1 %489  ;;  %693 = vmatprep.subr.mxu0 %v618_v12 }
 0x5b7   :  { %v493_v16 = vsel %vm117_vm8, %v490_v14, %v492_v8  ;;  %v494_v17 = vsel %vm117_vm8, %v488_v51, %v490_v14  ;;  %694 = vmatpush1.msra.mxu0 %v617_v11 }
 0x5b8   :  { %v619_v18 = vmul.f32 %v583_v9, %v494_v17  ;;  %v620_v19 = vmul.f32 %v584_v13, %v493_v16  ;;  %827 = vmatmul.mubr.msk.f32.vlgmr.msra.gmra.mxu0 %vm292_vm9, %v653_v15 }
 0x5ba   :  { %764 = vmatprep.subr.mxu1 %v620_v19 }
 0x5bb   :  { %765 = vmatpush1.msra.mxu1 %v619_v18 }
 0x5bc   :  { %828 = vmatmul.mubr.msk.f32.vlgmr.msra.gmra.mxu1 %vm292_vm9, %v653_v15 }
 0x5c3   :  { %v658_v21 = vpop.permute.xlu1 %657 }
 0x678   :  { %v729_v22 = vpop.f32.mrf.mxu0 }
 0x679   :  { %v730_v53 = vadd.f32 %v729_v22, %v658_v21 }
 0x67a   :  { %v731_v23 = vpop.f32.mrf.mxu0 }
 0x67b   :  { %v732_v48 = vadd.f32 %v731_v23, %v658_v21  ;;  %v805_v24 = vadd.f32 %v848_v57, %v730_v53 }
 0x67c   :  { %v800_v49 = vpop.f32.mrf.mxu1 }
 0x67d   :  { %v806_v47 = vadd.f32 %v732_v48, %v926_v2  ;;  %v801_v62 = vadd.f32 %v800_v49, %v658_v21 }
 0x67e   :  { %v802_v25 = vpop.f32.mrf.mxu1 }
 0x67f   :  { %v811_v20 = vcombine.low %v805_v24, %v806_v47  ;;  %v803_v59 = vadd.f32 %v802_v25, %v658_v21  ;;  %v807_v27 = vadd.f32 %v849_v26, %v801_v62 }
 0x681   :  { %813 = vst [vmem:[%s1537_s11] sm:$0xff] %v811_v20  ;;  %v808_v28 = vadd.f32 %v803_v59, %v928_v3 }
 0x683   :  { %v816_v29 = vcombine.low %v807_v27, %v808_v28 }
 0x685   :  { %829 = vst [vmem:[%s1537_s11 + $0x8] sm:$0xff] %v816_v29 }

</bundles_post_ra>
